<compile_context>
chip_gen: v6e
topology: v6e:2x2x1
jax: 0.10.0
libtpu: 0.0.40
codegen_flags: <defaults>
</compile_context>

<pallas_src>
import jax
import jax.numpy as jnp
from jax.experimental import pallas as pl
from jax.experimental.pallas import tpu as pltpu


# Hidden sizes are fixed by the PyTorch module.
_H1, _H2, _H3 = 256, 128, 64
# Lane-aligned offsets of each bias inside the packed bias buffer.
_B_OFF = (0, _H1, _H1 + _H2, _H1 + _H2 + 128)   # 0, 256, 384, 512


def _round_up(x, m):
    return ((x + m - 1) // m) * m


def fnn_kernel(x_ref, w1_ref, w2_ref, w3_ref, w4_ref, b_ref, out_ref):
    """Fused Linear->ReLU->Linear->ReLU->Linear->ReLU->Linear (one batch tile)."""
    c_out_pad = w4_ref.shape[1]
    wdt = w1_ref.dtype  # bf16 weights; activations cast to wdt only for the MXU

    h = jnp.dot(x_ref[...].astype(wdt), w1_ref[...],
                preferred_element_type=jnp.float32)
    h = jnp.maximum(h + b_ref[:, _B_OFF[0]:_B_OFF[0] + _H1], 0.0)

    h = jnp.dot(h.astype(wdt), w2_ref[...], preferred_element_type=jnp.float32)
    h = jnp.maximum(h + b_ref[:, _B_OFF[1]:_B_OFF[1] + _H2], 0.0)

    h = jnp.dot(h.astype(wdt), w3_ref[...], preferred_element_type=jnp.float32)
    h = jnp.maximum(h + b_ref[:, _B_OFF[2]:_B_OFF[2] + _H3], 0.0)

    out = jnp.dot(h.astype(wdt), w4_ref[...], preferred_element_type=jnp.float32)
    out = out + b_ref[:, _B_OFF[3]:_B_OFF[3] + c_out_pad]
    out_ref[...] = out.astype(out_ref.dtype)


def fnn_forward(x, packed, c_out):
    """Run the fused FNN forward pass with a single batch-gridded pallas_call."""
    w1, w2, w3, w4p, b_packed = packed
    B, d_in = x.shape
    c_out_pad = w4p.shape[1]

    # Batch tile: multiple of 8 sublanes; 256 fills the v6e/v7x MXU M-dim.
    TB = min(256, _round_up(max(B, 1), 8))
    grid = (pl.cdiv(B, TB),)

    flops = 2 * B * (d_in * _H1 + _H1 * _H2 + _H2 * _H3 + _H3 * c_out_pad)
    bytes_accessed = (
        x.size * x.dtype.itemsize
        + sum(int(w.size) * w.dtype.itemsize for w in (w1, w2, w3, w4p))
        + b_packed.size * 4
        + B * c_out_pad * 4)

    def _const_spec(shape):
        return pl.BlockSpec(shape, lambda i: (0, 0))   # weight-resident, no re-DMA

    out = pl.pallas_call(
        fnn_kernel,
        out_shape=jax.ShapeDtypeStruct((B, c_out_pad), jnp.float32),
        grid=grid,
        in_specs=[
            pl.BlockSpec((TB, d_in), lambda i: (i, 0)),   # x: tiled over batch
            _const_spec(w1.shape),
            _const_spec(w2.shape),
            _const_spec(w3.shape),
            _const_spec(w4p.shape),
            _const_spec(b_packed.shape),
        ],
        out_specs=pl.BlockSpec((TB, c_out_pad), lambda i: (i, 0)),
        compiler_params=pltpu.CompilerParams(
            dimension_semantics=("parallel",)),
        cost_estimate=pl.CostEstimate(flops=flops,
                                      transcendentals=0,
                                      bytes_accessed=bytes_accessed),
    )(x, w1, w2, w3, w4p, b_packed)
    return out[:, :c_out]


class FNNPallas:
    """JAX/Pallas equivalent of COVID-MTL's FNN module."""

    def __init__(self, input_size, output_size, key, weight_dtype=jnp.bfloat16):
        self.output_size = output_size
        self.weight_dtype = weight_dtype

        sizes = [(input_size, _H1), (_H1, _H2), (_H2, _H3), (_H3, output_size)]
        self.params = []   # f32 master copies, (in, out) layout (x @ W == nn.Linear)
        for fan_in, fan_out in sizes:
            key, kw, kb = jax.random.split(key, 3)
            bound = 1.0 / (fan_in ** 0.5)   # PyTorch nn.Linear default init
            w = jax.random.uniform(kw, (fan_in, fan_out), jnp.float32,
                                   minval=-bound, maxval=bound)
            b = jax.random.uniform(kb, (fan_out,), jnp.float32,
                                   minval=-bound, maxval=bound)
            self.params.append((w, b))

        # ---- Pre-pack ONCE at init (not per forward call). ----
        (w1, b1), (w2, b2), (w3, b3), (w4, b4) = self.params
        c_out_pad = max(128, _round_up(output_size, 128))   # lane-dense output

        w4p = jnp.zeros((_H3, c_out_pad), jnp.float32).at[:, :output_size].set(w4)

        bias_w = _B_OFF[3] + c_out_pad
        b_packed = jnp.zeros((1, bias_w), jnp.float32)
        b_packed = b_packed.at[0, _B_OFF[0]:_B_OFF[0] + _H1].set(b1)
        b_packed = b_packed.at[0, _B_OFF[1]:_B_OFF[1] + _H2].set(b2)
        b_packed = b_packed.at[0, _B_OFF[2]:_B_OFF[2] + _H3].set(b3)
        b_packed = b_packed.at[0, _B_OFF[3]:_B_OFF[3] + output_size].set(b4)

        self._packed = (w1.astype(weight_dtype),
                        w2.astype(weight_dtype),
                        w3.astype(weight_dtype),
                        w4p.astype(weight_dtype),
                        b_packed)                            # biases stay f32 (VPU math)
        self._packed = tuple(jax.device_put(a) for a in self._packed)

    def __call__(self, x):
        return fnn_forward(x, self._packed, self.output_size)


def _reference_fnn(x, params, weight_dtype):
    """Pure-JAX reference with the same bf16 weight/activation quantization."""
    h = x.astype(jnp.float32)
    for i, (w, b) in enumerate(params):
        wq = w.astype(weight_dtype).astype(jnp.float32)
        hq = h.astype(weight_dtype).astype(jnp.float32)
        h = jnp.dot(hq, wq, precision=jax.lax.Precision.HIGHEST) + b
        if i < 3:
            h = jnp.maximum(h, 0.0)
    return h


if __name__ == "__main__":
    key = jax.random.PRNGKey(0)
    k_model, k_x = jax.random.split(key)

    B, INPUT_SIZE, OUTPUT_SIZE = 8, 32, 4
    model = FNNPallas(INPUT_SIZE, OUTPUT_SIZE, k_model)
    x = jax.random.normal(k_x, (B, INPUT_SIZE), jnp.float32)

    out = model(x)
    jax.block_until_ready(out)

    ref = _reference_fnn(x, model.params, model.weight_dtype)
    assert out.shape == (B, OUTPUT_SIZE), out.shape
    assert jnp.allclose(out, ref, atol=2e-2, rtol=2e-2), (out, ref)

    print("KERNEL_OK")
</pallas_src>

<mosaic_0001>
module attributes {stable_mosaic.version = 11 : i64} {
  func.func @fnn_kernel(%arg0: i32, %arg1: memref<8x32xf32, #tpu.memory_space<vmem>>, %arg2: memref<32x256xbf16, #tpu.memory_space<vmem>>, %arg3: memref<256x128xbf16, #tpu.memory_space<vmem>>, %arg4: memref<128x64xbf16, #tpu.memory_space<vmem>>, %arg5: memref<64x128xbf16, #tpu.memory_space<vmem>>, %arg6: memref<1x640xf32, #tpu.memory_space<vmem>>, %arg7: memref<8x128xf32, #tpu.memory_space<vmem>>) attributes {dimension_semantics = [#tpu.dimension_semantics<parallel>], iteration_bounds = array<i64: 1>, scalar_prefetch = 0 : i64, scratch_operands = 0 : i64, tpu.core_type = #tpu.core_type<tc>, window_params = [{transform_indices = @transform_0, window_bounds = array<i64: 8, 32>}, {pipeline_mode = #tpu.pipeline_mode<synchronous>, transform_indices = @transform_1, window_bounds = array<i64: 32, 256>}, {pipeline_mode = #tpu.pipeline_mode<synchronous>, transform_indices = @transform_2, window_bounds = array<i64: 256, 128>}, {pipeline_mode = #tpu.pipeline_mode<synchronous>, transform_indices = @transform_3, window_bounds = array<i64: 128, 64>}, {pipeline_mode = #tpu.pipeline_mode<synchronous>, transform_indices = @transform_4, window_bounds = array<i64: 64, 128>}, {pipeline_mode = #tpu.pipeline_mode<synchronous>, transform_indices = @transform_5, window_bounds = array<i64: 1, 640>}, {transform_indices = @transform_6, window_bounds = array<i64: 8, 128>}]} {
    %c0 = arith.constant 0 : index
    %c0_0 = arith.constant 0 : index
    %0 = vector.load %arg1[%c0, %c0_0] : memref<8x32xf32, #tpu.memory_space<vmem>>, vector<8x32xf32>
    %1 = arith.truncf %0 : vector<8x32xf32> to vector<8x32xbf16>
    %c0_1 = arith.constant 0 : index
    %c0_2 = arith.constant 0 : index
    %2 = vector.load %arg2[%c0_1, %c0_2] : memref<32x256xbf16, #tpu.memory_space<vmem>>, vector<32x256xbf16>
    %cst = arith.constant dense<0.000000e+00> : vector<8x256xf32>
    %3 = tpu.matmul %1, %2, %cst {dimension_numbers = #tpu.dot_dimension_numbers<[1], [0], [0], [1], [0, 0, 1, 1], [], []>} : vector<8x32xbf16>, vector<32x256xbf16>, vector<8x256xf32> -> vector<8x256xf32>
    %c0_3 = arith.constant 0 : index
    %c0_4 = arith.constant 0 : index
    %4 = vector.load %arg6[%c0_3, %c0_4] : memref<1x640xf32, #tpu.memory_space<vmem>>, vector<1x256xf32>
    %5 = vector.broadcast %4 : vector<1x256xf32> to vector<8x256xf32>
    %6 = arith.addf %3, %5 : vector<8x256xf32>
    %cst_5 = arith.constant 0.000000e+00 : f32
    %7 = vector.broadcast %cst_5 : f32 to vector<8x256xf32>
    %8 = arith.maximumf %6, %7 : vector<8x256xf32>
    %9 = arith.truncf %8 : vector<8x256xf32> to vector<8x256xbf16>
    %c0_6 = arith.constant 0 : index
    %c0_7 = arith.constant 0 : index
    %10 = vector.load %arg3[%c0_6, %c0_7] : memref<256x128xbf16, #tpu.memory_space<vmem>>, vector<256x128xbf16>
    %cst_8 = arith.constant dense<0.000000e+00> : vector<8x128xf32>
    %11 = tpu.matmul %9, %10, %cst_8 {dimension_numbers = #tpu.dot_dimension_numbers<[1], [0], [0], [1], [0, 0, 1, 1], [], []>} : vector<8x256xbf16>, vector<256x128xbf16>, vector<8x128xf32> -> vector<8x128xf32>
    %c0_9 = arith.constant 0 : index
    %c256 = arith.constant 256 : index
    %12 = vector.load %arg6[%c0_9, %c256] : memref<1x640xf32, #tpu.memory_space<vmem>>, vector<1x128xf32>
    %13 = vector.broadcast %12 : vector<1x128xf32> to vector<8x128xf32>
    %14 = arith.addf %11, %13 : vector<8x128xf32>
    %cst_10 = arith.constant 0.000000e+00 : f32
    %15 = vector.broadcast %cst_10 : f32 to vector<8x128xf32>
    %16 = arith.maximumf %14, %15 : vector<8x128xf32>
    %17 = arith.truncf %16 : vector<8x128xf32> to vector<8x128xbf16>
    %c0_11 = arith.constant 0 : index
    %c0_12 = arith.constant 0 : index
    %18 = vector.load %arg4[%c0_11, %c0_12] : memref<128x64xbf16, #tpu.memory_space<vmem>>, vector<128x64xbf16>
    %cst_13 = arith.constant dense<0.000000e+00> : vector<8x64xf32>
    %19 = tpu.matmul %17, %18, %cst_13 {dimension_numbers = #tpu.dot_dimension_numbers<[1], [0], [0], [1], [0, 0, 1, 1], [], []>} : vector<8x128xbf16>, vector<128x64xbf16>, vector<8x64xf32> -> vector<8x64xf32>
    %c0_14 = arith.constant 0 : index
    %c384 = arith.constant 384 : index
    %20 = vector.load %arg6[%c0_14, %c384] : memref<1x640xf32, #tpu.memory_space<vmem>>, vector<1x64xf32>
    %21 = vector.broadcast %20 : vector<1x64xf32> to vector<8x64xf32>
    %22 = arith.addf %19, %21 : vector<8x64xf32>
    %cst_15 = arith.constant 0.000000e+00 : f32
    %23 = vector.broadcast %cst_15 : f32 to vector<8x64xf32>
    %24 = arith.maximumf %22, %23 : vector<8x64xf32>
    %25 = arith.truncf %24 : vector<8x64xf32> to vector<8x64xbf16>
    %c0_16 = arith.constant 0 : index
    %c0_17 = arith.constant 0 : index
    %26 = vector.load %arg5[%c0_16, %c0_17] : memref<64x128xbf16, #tpu.memory_space<vmem>>, vector<64x128xbf16>
    %cst_18 = arith.constant dense<0.000000e+00> : vector<8x128xf32>
    %27 = tpu.matmul %25, %26, %cst_18 {dimension_numbers = #tpu.dot_dimension_numbers<[1], [0], [0], [1], [0, 0, 1, 1], [], []>} : vector<8x64xbf16>, vector<64x128xbf16>, vector<8x128xf32> -> vector<8x128xf32>
    %c0_19 = arith.constant 0 : index
    %c512 = arith.constant 512 : index
    %28 = vector.load %arg6[%c0_19, %c512] : memref<1x640xf32, #tpu.memory_space<vmem>>, vector<1x128xf32>
    %29 = vector.broadcast %28 : vector<1x128xf32> to vector<8x128xf32>
    %30 = arith.addf %27, %29 : vector<8x128xf32>
    %c0_20 = arith.constant 0 : index
    %c0_21 = arith.constant 0 : index
    %31 = vector.load %arg7[%c0_20, %c0_21] : memref<8x128xf32, #tpu.memory_space<vmem>>, vector<8x128xf32>
    tpu.vector_store %arg7[%c0_20, %c0_21], %30 {strides = array<i32>} : memref<8x128xf32, #tpu.memory_space<vmem>>, vector<8x128xf32>,
    return
  }
  func.func @transform_0(%arg0: i32) -> (i32, i32) {
    %c0_i32 = arith.constant 0 : i32
    %c0_i32_0 = arith.constant 0 : i32
    return %arg0, %c0_i32 : i32, i32
  }
  func.func @transform_1(%arg0: i32) -> (i32, i32) {
    %c0_i32 = arith.constant 0 : i32
    %c0_i32_0 = arith.constant 0 : i32
    %c0_i32_1 = arith.constant 0 : i32
    return %c0_i32, %c0_i32_0 : i32, i32
  }
  func.func @transform_2(%arg0: i32) -> (i32, i32) {
    %c0_i32 = arith.constant 0 : i32
    %c0_i32_0 = arith.constant 0 : i32
    %c0_i32_1 = arith.constant 0 : i32
    return %c0_i32, %c0_i32_0 : i32, i32
  }
  func.func @transform_3(%arg0: i32) -> (i32, i32) {
    %c0_i32 = arith.constant 0 : i32
    %c0_i32_0 = arith.constant 0 : i32
    %c0_i32_1 = arith.constant 0 : i32
    return %c0_i32, %c0_i32_0 : i32, i32
  }
  func.func @transform_4(%arg0: i32) -> (i32, i32) {
    %c0_i32 = arith.constant 0 : i32
    %c0_i32_0 = arith.constant 0 : i32
    %c0_i32_1 = arith.constant 0 : i32
    return %c0_i32, %c0_i32_0 : i32, i32
  }
  func.func @transform_5(%arg0: i32) -> (i32, i32) {
    %c0_i32 = arith.constant 0 : i32
    %c0_i32_0 = arith.constant 0 : i32
    %c0_i32_1 = arith.constant 0 : i32
    return %c0_i32, %c0_i32_0 : i32, i32
  }
  func.func @transform_6(%arg0: i32) -> (i32, i32) {
    %c0_i32 = arith.constant 0 : i32
    %c0_i32_0 = arith.constant 0 : i32
    return %arg0, %c0_i32 : i32, i32
  }
}

</mosaic_0001>

<bundles_post_ra>
// kernel: tpu_custom_call.1
= control target key start
LH: loop header
LB: loop body
LE: loop exit
PB: predicated region body
PF: predicated region fallthrough
CT: control target
= control target key end

     0   :  { %11 = vsyncpa [#allocation3], 0  ;;  %s830_s0 = inlined_call_operand.vmem [shape: f32[8,32], index: 0, kind: input, shape index: {}]   ;;  %s831_s1 = inlined_call_operand.vmem [shape: bf16[32,256], index: 1, kind: input, shape index: {}]   ;;  %s832_s2 = inlined_call_operand.hbm [shape: bf16[256,128], index: 2, kind: input, shape index: {}]   ;;  %s833_s3 = inlined_call_operand.vmem [shape: bf16[128,64], index: 3, kind: input, shape index: {}]   ;;  %s834_s4 = inlined_call_operand.vmem [shape: bf16[64,128], index: 4, kind: input, shape index: {}]   ;;  %s835_s5 = inlined_call_operand.vmem [shape: f32[1,640], index: 5, kind: input, shape index: {}]   ;;  %s836_s6 = inlined_call_operand.hbm [shape: f32[8,128], index: 6, kind: output, shape index: {}]  }
   0x1   :  { %12 = vsyncpa [#allocation4], 0  ;;  %s705_s21 = smov [#allocation2]  }
   0x2   :  { %s22_s22 = sshll.u32 %s705_s21, 4  ;;  %s23_s22 = int_to_ptr.vmem [resolvable:$true] %s22_s22 }
   0x3   :  { %s669_s23 = scalar_lea.vmem %s23_s22, 2048  ;;  %p674_p1 = scmp.lt.s32.totalorder %s23_s22, %s23_s22 }
   0x4   :  { %p670_p0 = scmp.ne.s32.totalorder %s23_s22, %s669_s23  ;;  %p675_p2 = scmp.lt.s32.totalorder %s669_s23, %s669_s23 }
   0x6   :  { %p676_p3 = por %p675_p2, %p674_p1 }
   0x8   :  { %p677_p4 = pnand %p676_p3, %p670_p0 }
   0xa   :  { %680 = shalt.err (!%p677_p4)
}
   0xb   :  { %s706_s24 = smov 64   ;;  %s707_s25 = smov 4  }
   0xc   :  { %28 = dma.hbm_to_vmem [thread:$0]  %s832_s2, 2048, %s23_s22, [#allocation3], %s706_s24, %s706_s24, %s707_s25  }
   0xd   :  { %701 = dma.done.wait [#allocation3], 2048  }
   0xe   :  { %702 = vsyncadd [#allocation3], 4294965248  ;;  %v708_v0 = vmov 0   ;;  %v627_v1 = vld [vmem:[%s831_s1 + $0x14] ss:$8 sps:$4 sm:$0xff]   ;;  %v39_v5 = vld [vmem:[%s830_s0] sm:$0xff]  ;;  %v47_v29 = vlaneseq }
   0xf   :  { %113 = vmatprep.mubr.bf16.mxu0 %v708_v0  ;;  %v629_v2 = vld [vmem:[%s831_s1 + $0x10] ss:$8 sps:$4 sm:$0xff]   ;;  %93 = vmatprep.subr.bf16.mxu0 %v627_v1  ;;  %v630_v3 = vld [vmem:[%s831_s1 + $0x4] ss:$8 sps:$4 sm:$0xff]   ;;  %v632_v4 = vld [vmem:[%s831_s1] ss:$8 sps:$4 sm:$0xff]   ;;  %v40_v9 = vpack.c.bf16 %v39_v5, %v39_v5 }
  0x10   :  { %94 = vmatpush1.bf16.msra.mxu0 %v629_v2  ;;  %v633_v6 = vld [vmem:[#allocation2 + $0x78] sm:$0xff]   ;;  %v635_v8 = vld [vmem:[#allocation2 + $0x70] sm:$0xff]   ;;  %vm77_vm0 = vcmask 261120   ;;  %v637_v11 = vld [vmem:[#allocation2 + $0x68] sm:$0xff]   ;;  %v709_v24 = vmov 0.0   ;;  %v48_v30 = vshrl.u32 %v47_v29, 7 }
  0x11   :  { %95 = vmatprep.subr.bf16.mxu0 %v630_v3  ;;  %v634_v7 = vld [vmem:[#allocation2 + $0x38] sm:$0xff]   ;;  %552 = vmatprep.subr.bf16.mxu1 %v633_v6  ;;  %v636_v10 = vld [vmem:[#allocation2 + $0x30] sm:$0xff]   ;;  %v638_v12 = vld [vmem:[#allocation2 + $0x28] sm:$0xff]   ;;  %vm710_vm1 = vmmov 0   ;;  %vm455_vm2 = vcmask 523264   ;;  %s711_s15 = smov [#allocation5]  }
  0x12   :  { %553 = vmatpush3.bf16.msra.mxu1 %v634_v7  ;;  %v639_v13 = vld [vmem:[#allocation2 + $0x60] sm:$0xff]   ;;  %v641_v15 = vld [vmem:[#allocation2 + $0x58] sm:$0xff]   ;;  %v643_v17 = vld [vmem:[#allocation2 + $0x50] sm:$0xff]   ;;  %v49_v31 = vsub.s32 0, %v48_v30  ;;  %v53_v33 = vsub.s32 1, %v48_v30 }
  0x13   :  { %554 = vmatprep.subr.bf16.mxu1 %v635_v8  ;;  %v640_v14 = vld [vmem:[#allocation2 + $0x20] sm:$0xff]   ;;  %v642_v16 = vld [vmem:[#allocation2 + $0x18] sm:$0xff]   ;;  %v644_v18 = vld [vmem:[#allocation2 + $0x10] sm:$0xff]  }
  0x14   :  { %96 = vmatpush1.bf16.msra.mxu0 %v632_v4  ;;  %v645_v19 = vld [vmem:[#allocation2 + $0x48] sm:$0xff]   ;;  %v647_v21 = vld [vmem:[#allocation2 + $0x40] sm:$0xff]   ;;  %v649_v23 = vld [vmem:[%s833_s3 + $0x38] sm:$0xff]  }
  0x15   :  { %v646_v20 = vld [vmem:[#allocation2 + $0x8] sm:$0xff]   ;;  %v648_v22 = vld [vmem:[#allocation2] sm:$0xff]   ;;  %588 = vmatprep.subr.bf16.mxu0 %v709_v24  ;;  %v650_v25 = vld [vmem:[%s833_s3 + $0x30] sm:$0xff]  }
  0x16   :  { %555 = vmatpush3.bf16.msra.mxu1 %v636_v10  ;;  %v651_v26 = vld [vmem:[%s833_s3 + $0x28] sm:$0xff]   ;;  %v652_v27 = vld [vmem:[%s833_s3 + $0x20] sm:$0xff]   ;;  %v653_v28 = vld [vmem:[%s833_s3 + $0x18] sm:$0xff]  }
  0x17   :  { %519 = vmatmul.mubr.msk.bf16.vlgmr.msra.gmra.mxu0 %vm77_vm0, %v40_v9  ;;  %556 = vmatprep.subr.bf16.mxu1 %v637_v11  ;;  %v45_v32 = vld [vmem:[%s835_s5] sm:$0x3]  ;;  %v654_v46 = vld [vmem:[%s833_s3 + $0x10] sm:$0xff]   ;;  %v655_v47 = vld [vmem:[%s833_s3 + $0x8] sm:$0xff]  }
  0x18   :  { %589 = vmatpush3.bf16.msra.mxu0 %v649_v23  ;;  %v50_v34 = vrot.slane %v45_v32, %v49_v31  ;;  %v54_v35 = vrot.slane %v45_v32, %v53_v33  ;;  %v656_v48 = vld [vmem:[%s833_s3] sm:$0xff]   ;;  %604 = vmatprep.mubr.msk.bf16.mxu0 %vm710_vm1, %v709_v24  ;;  %v657_v49 = vld [vmem:[%s834_s4 + $0x18] sm:$0xff]   ;;  %v658_v50 = vld [vmem:[%s834_s4 + $0x10] sm:$0xff]  }
  0x19   :  { %590 = vmatprep.subr.bf16.mxu0 %v709_v24  ;;  %v520_v52 = vld [vmem:[%s835_s5 + $0x2] ss:$0 sm:$0xff]  ;;  %v659_v60 = vld [vmem:[%s834_s4 + $0x8] sm:$0xff]   ;;  %v537_v62 = vld [vmem:[%s835_s5 + $0x3] ss:$0 sm:$0xff] }
  0x1a   :  { %557 = vmatpush3.bf16.msra.mxu1 %v638_v12  ;;  %v660_v61 = vld [vmem:[%s834_s4] sm:$0xff]   ;;  %s506_s4 = sshll.u32 %s711_s15, 4  ;;  %s507_s4 = int_to_ptr.vmem [resolvable:$true] %s506_s4 }
  0x1b   :  { %558 = vmatprep.subr.bf16.mxu1 %v639_v13  ;;  %v546_v6 = vld [vmem:[%s835_s5 + $0x4] ss:$0 sm:$0xff]  ;;  %s681_s16 = scalar_lea.vmem %s507_s4, 128  ;;  %p686_p6 = scmp.lt.s32.totalorder %s507_s4, %s507_s4 }
  0x1c   :  { %591 = vmatpush3.bf16.msra.mxu0 %v650_v25  ;;  %p682_p5 = scmp.ne.s32.totalorder %s507_s4, %s681_s16  ;;  %p687_p7 = scmp.lt.s32.totalorder %s681_s16, %s681_s16 }
  0x1d   :  { %592 = vmatprep.subr.bf16.mxu0 %v709_v24 }
  0x1e   :  { %559 = vmatpush3.bf16.msra.mxu1 %v640_v14  ;;  %p688_p8 = por %p687_p7, %p686_p6 }
  0x1f   :  { %560 = vmatprep.subr.bf16.mxu1 %v641_v15 }
  0x20   :  { %593 = vmatpush3.bf16.msra.mxu0 %v651_v26  ;;  %p689_p9 = pnand %p688_p8, %p682_p5 }
  0x21   :  { %594 = vmatprep.subr.bf16.mxu0 %v709_v24 }
  0x22   :  { %561 = vmatpush3.bf16.msra.mxu1 %v642_v16 }
  0x23   :  { %562 = vmatprep.subr.bf16.mxu1 %v643_v17 }
  0x24   :  { %595 = vmatpush3.bf16.msra.mxu0 %v652_v27 }
  0x25   :  { %596 = vmatprep.subr.bf16.mxu0 %v709_v24 }
  0x26   :  { %563 = vmatpush3.bf16.msra.mxu1 %v644_v18 }
  0x27   :  { %564 = vmatprep.subr.bf16.mxu1 %v645_v19 }
  0x28   :  { %597 = vmatpush3.bf16.msra.mxu0 %v653_v28 }
  0x29   :  { %598 = vmatprep.subr.bf16.mxu0 %v709_v24 }
  0x2a   :  { %565 = vmatpush3.bf16.msra.mxu1 %v646_v20 }
  0x2b   :  { %566 = vmatprep.subr.bf16.mxu1 %v647_v21 }
  0x2c   :  { %599 = vmatpush3.bf16.msra.mxu0 %v654_v46 }
  0x2d   :  { %600 = vmatprep.subr.bf16.mxu0 %v709_v24 }
  0x2e   :  { %567 = vmatpush3.bf16.msra.mxu1 %v648_v22 }
  0x2f   :  { %608 = vmatprep.subr.bf16.mxu1 %v709_v24 }
  0x30   :  { %601 = vmatpush3.bf16.msra.mxu0 %v655_v47 }
  0x31   :  { %602 = vmatprep.subr.bf16.mxu0 %v709_v24 }
  0x34   :  { %603 = vmatpush3.bf16.msra.mxu0 %v656_v48 }
  0xd7   :  { %v115_v36 = vpop.f32.mrf.mxu0 }
  0xd8   :  { %v116_v37 = vadd.f32 %v115_v36, %v50_v34 }
  0xd9   :  { %v117_v38 = vpop.f32.mrf.mxu0 }
  0xda   :  { %v118_v39 = vadd.f32 %v117_v38, %v54_v35  ;;  %v122_v40 = vmax.f32 %v116_v37, 0.0 }
  0xdb   :  { %v119_v41 = vpop.f32.mrf.mxu0 }
  0xdc   :  { %v123_v42 = vmax.f32 %v118_v39, 0.0  ;;  %v124_v45 = vpack.c.bf16 %v122_v40, %v122_v40 }
  0xdd   :  { %v120_v43 = vpop.f32.mrf.mxu0 }
  0xde   :  { %v125_v44 = vpack.c.bf16 %v123_v42, %v123_v42 }
  0xe0   :  { %293 = vmatprep.mubr.bf16.mxu1 %v125_v44 }
  0xe1   :  { %294 = vmatmul.mubr.bf16.vlgmr.msra.gmra.mxu1 %v124_v45 }
  0xe2   :  { %616 = vmatprep.mubr.msk.bf16.mxu1 %vm710_vm1, %v709_v24  ;;  %609 = vmatpush3.bf16.msra.mxu1 %v657_v49 }
  0xe3   :  { %610 = vmatprep.subr.bf16.mxu1 %v709_v24 }
  0xe6   :  { %611 = vmatpush3.bf16.msra.mxu1 %v658_v50 }
  0xe7   :  { %612 = vmatprep.subr.bf16.mxu1 %v709_v24 }
  0xea   :  { %613 = vmatpush3.bf16.msra.mxu1 %v659_v60 }
  0xeb   :  { %614 = vmatprep.subr.bf16.mxu1 %v709_v24 }
  0xee   :  { %615 = vmatpush3.bf16.msra.mxu1 %v660_v61 }
 0x1a1   :  { %v568_v51 = vpop.f32.mrf.mxu1 }
 0x1a3   :  { %v569_v53 = vpop.f32.mrf.mxu1 }
 0x1a4   :  { %v570_v54 = vadd.f32 %v569_v53, %v568_v51 }
 0x1a5   :  { %v571_v55 = vpop.f32.mrf.mxu1 }
 0x1a6   :  { %v296_v56 = vadd.f32 %v570_v54, %v520_v52 }
 0x1a7   :  { %v572_v57 = vpop.f32.mrf.mxu1 }
 0x1a8   :  { %v301_v58 = vmax.f32 %v296_v56, 0.0 }
 0x1aa   :  { %v302_v59 = vpack.c.bf16 %v301_v58, %v301_v58 }
 0x1ac   :  { %605 = vmatmul.mubr.bf16.vlgmr.msra.gmra.mxu0 %v302_v59 }
 0x26c   :  { %v408_v63 = vpop.f32.mrf.mxu0 }
 0x26d   :  { %v409_v0 = vadd.f32 %v537_v62, %v408_v63 }
 0x26e   :  { %v606_v1 = vpop.f32.mrf.mxu0 }
 0x26f   :  { %v414_v2 = vmax.f32 %v409_v0, 0.0 }
 0x270   :  { %v411_v3 = vpop.f32.mrf.mxu0 }
 0x271   :  { %v415_v4 = vpack.c.bf16 %v414_v2, %v414_v2 }
 0x272   :  { %v607_v5 = vpop.f32.mrf.mxu0 }
 0x273   :  { %617 = vmatmul.mubr.msk.bf16.vlgmr.msra.gmra.mxu1 %vm455_vm2, %v415_v4 }
 0x333   :  { %v493_v7 = vpop.f32.mrf.mxu1 }
 0x334   :  { %v494_v8 = vadd.f32 %v546_v6, %v493_v7 }
 0x335   :  { %v618_v9 = vpop.f32.mrf.mxu1 }
 0x336   :  { %499 = vst [vmem:[#allocation5] sm:$0xff] %v494_v8 }
 0x337   :  { %v496_v10 = vpop.f32.mrf.mxu1 }
 0x338   :  { %692 = shalt.err (!%p689_p9)
}
 0x339   :  { %509 = dma.vmem_to_hbm [thread:$0]  %s507_s4, 128, %s836_s6, [#allocation4]   ;;  %v619_v11 = vpop.f32.mrf.mxu1 }
 0x33a   :  { %703 = dma.done.wait [#allocation4], 128  }
 0x33b   :  { %704 = vsyncadd [#allocation4], 4294967168 }
 0x33c   :  { %513 = vsyncpa [#allocation3], 1 }
 0x33d   :  { %514 = vsyncpa [#allocation4], 1 }

</bundles_post_ra>
